<compile_context>
chip_gen: v5e
topology: v5e:2x2
jax: 0.10.0
libtpu: 0.0.40
codegen_flags: <defaults>
</compile_context>

<pallas_src>
import jax
import jax.numpy as jnp
from jax.experimental import pallas as pl
from jax.experimental.pallas import tpu as pltpu


def _round_up(v, m):
    return (v + m - 1) // m * m


def _vmem_budget_bytes():
    """Per-generation scoped-VMEM budget (v7x: 64 MiB phys, v5e/v6e: 128 MiB)."""
    cap = 64 * 1024 * 1024
    try:
        info = pltpu.get_tpu_info()
        cap = int(getattr(info, "vmem_capacity_bytes", cap))
    except Exception:
        pass
    return min(int(cap * 0.7), 100 * 1024 * 1024)


# ----------------------------- kernels --------------------------------------

def _encoder_kernel_fused(x_ref, w_ref, b_ref, o_ref):
    """Full-K contraction per (tm, tn) tile; bias + ReLU inline in f32."""
    acc = jnp.dot(x_ref[...], w_ref[...], preferred_element_type=jnp.float32)
    o_ref[...] = jnp.maximum(acc + b_ref[...], 0.0).astype(o_ref.dtype)


def _encoder_kernel_ktiled(x_ref, w_ref, b_ref, o_ref, acc_ref):
    """Fallback for huge K: grid (N, M, K); K is the 'arbitrary' reduction axis."""
    k = pl.program_id(2)

    @pl.when(k == 0)
    def _():
        acc_ref[...] = jnp.zeros_like(acc_ref)

    acc_ref[...] += jnp.dot(x_ref[...], w_ref[...],
                            preferred_element_type=jnp.float32)

    @pl.when(k == pl.num_programs(2) - 1)
    def _():
        out = acc_ref[...] + b_ref[...]
        o_ref[...] = jnp.maximum(out, 0.0).astype(o_ref.dtype)


# ----------------------------- wrapper ---------------------------------------

def encoder_forward(x, w_t, b, *, compute_dtype=jnp.bfloat16, k_tile=None):
    """relu(x @ w_t + b); x (B, K), w_t (K, H) (= PyTorch weight.T), b (H,)."""
    B, K = x.shape
    Kw, H = w_t.shape
    assert K == Kw, "weight/input contraction mismatch"
    out_dtype = x.dtype

    if compute_dtype is None:
        compute_dtype = x.dtype
    if x.dtype != compute_dtype:
        x = x.astype(compute_dtype)
    if w_t.dtype != compute_dtype:        # no-op if the weight is pre-cast bf16
        w_t = w_t.astype(compute_dtype)
    b2 = b.astype(jnp.float32).reshape(1, H)

    in_bytes = jnp.dtype(compute_dtype).itemsize
    out_bytes = jnp.dtype(out_dtype).itemsize
    align = 16 if in_bytes < 4 else 8     # bf16 sublane packing granularity
    budget = _vmem_budget_bytes()

    n_pad = _round_up(H, 128)
    m_rounded = _round_up(B, align)

    # Can the whole K contraction live in VMEM (double-buffered) at minimal tiles?
    min_fixed = (2 * K * 128 * in_bytes          # weight strip
                 + 2 * align * K * in_bytes      # x strip
                 + 2 * align * 128 * out_bytes   # output tile
                 + 2 * 128 * 4)                  # bias
    collapse_k = (k_tile is None) and (min_fixed <= budget // 2)

    cost = pl.CostEstimate(
        flops=2 * B * K * H,
        transcendentals=0,
        bytes_accessed=B * K * in_bytes + K * H * in_bytes
        + B * H * out_bytes + H * 4,
    )

    if collapse_k:
        tk = K  # full contraction, no K padding needed (block dim == array dim)

        # Weight-stationary if the full (K, n_pad) weight fits half the budget.
        if 2 * K * n_pad * in_bytes <= budget // 2:
            tn = n_pad
        else:
            tn = max(128, ((budget // 2) // (2 * K * in_bytes)) // 128 * 128)

        fixed = 2 * K * tn * in_bytes + 2 * tn * 4
        per_tm = 2 * K * in_bytes + 2 * tn * out_bytes
        tm_budget = max(align, ((budget - fixed) // per_tm) // align * align)
        tm = max(align, min(512, m_rounded, tm_budget))

        m_grid = pl.cdiv(B, tm)
        n_grid = pl.cdiv(H, tn)

        # v7x megacore: make sure both TensorCores get a tile when possible.
        if m_grid * n_grid < 2:
            if n_pad >= 256:
                tn = _round_up(n_pad // 2, 128)
                n_grid = pl.cdiv(H, tn)
            elif m_rounded >= 2 * align:
                tm = _round_up(m_rounded // 2, align)
                m_grid = pl.cdiv(B, tm)

        grid = (n_grid, m_grid)  # N outer, M inner -> weight block index constant

        return pl.pallas_call(
            _encoder_kernel_fused,
            out_shape=jax.ShapeDtypeStruct((B, H), out_dtype),
            grid_spec=pltpu.PrefetchScalarGridSpec(
                num_scalar_prefetch=0,
                grid=grid,
                in_specs=[
                    pl.BlockSpec((tm, K), lambda j, i: (i, 0)),   # x tile
                    pl.BlockSpec((K, tn), lambda j, i: (0, j)),   # weight (stationary over i)
                    pl.BlockSpec((1, tn), lambda j, i: (0, j)),   # bias
                ],
                out_specs=pl.BlockSpec((tm, tn), lambda j, i: (i, j)),
            ),
            compiler_params=pltpu.CompilerParams(
                dimension_semantics=("parallel", "parallel"),
                vmem_limit_bytes=int(budget)),
            cost_estimate=cost,
        )(x, w_t, b2)

    # ---------------- K-tiled fallback (very large K, or forced) -------------
    tk = k_tile if k_tile is not None else 2048
    tk = min(_round_up(min(tk, K), 128), _round_up(K, 128))
    k_pad = _round_up(K, tk)

    # K tail MUST be zero-padded: Pallas edge-block padding is not guaranteed 0.
    x_p = jnp.pad(x, ((0, 0), (0, k_pad - K))) if k_pad != K else x
    w_p = jnp.pad(w_t, ((0, k_pad - K), (0, 0))) if k_pad != K else w_t

    if 2 * tk * n_pad * in_bytes <= budget // 2:
        tn = n_pad
    else:
        tn = max(128, ((budget // 2) // (2 * tk * in_bytes)) // 128 * 128)

    fixed = 2 * tk * tn * in_bytes + 2 * tn * 4
    per_tm = 2 * tk * in_bytes + 2 * tn * out_bytes + tn * 4  # + f32 acc scratch
    tm_budget = max(align, ((budget - fixed) // per_tm) // align * align)
    tm = max(align, min(512, m_rounded, tm_budget))

    grid = (pl.cdiv(H, tn), pl.cdiv(B, tm), k_pad // tk)

    return pl.pallas_call(
        _encoder_kernel_ktiled,
        out_shape=jax.ShapeDtypeStruct((B, H), out_dtype),
        grid_spec=pltpu.PrefetchScalarGridSpec(
            num_scalar_prefetch=0,
            grid=grid,
            in_specs=[
                pl.BlockSpec((tm, tk), lambda j, i, k: (i, k)),
                pl.BlockSpec((tk, tn), lambda j, i, k: (k, j)),
                pl.BlockSpec((1, tn), lambda j, i, k: (0, j)),
            ],
            out_specs=pl.BlockSpec((tm, tn), lambda j, i, k: (i, j)),
            scratch_shapes=[pltpu.VMEM((tm, tn), jnp.float32)],
        ),
        compiler_params=pltpu.CompilerParams(
            dimension_semantics=("parallel", "parallel", "arbitrary"),
            vmem_limit_bytes=int(budget)),
        cost_estimate=cost,
    )(x_p, w_p, b2)


# ----------------------------- test harness ----------------------------------

def _make_linear_params(key, in_dim, hidden_dim):
    """nn.Linear-style uniform(-1/sqrt(in_dim), 1/sqrt(in_dim)) init."""
    kw, kb = jax.random.split(key)
    bound = 1.0 / jnp.sqrt(jnp.float32(in_dim))
    w = jax.random.uniform(kw, (hidden_dim, in_dim), minval=-bound,
                           maxval=bound, dtype=jnp.float32)  # PyTorch (out, in)
    b = jax.random.uniform(kb, (hidden_dim,), minval=-bound,
                           maxval=bound, dtype=jnp.float32)
    return w, b


if __name__ == "__main__":
    key = jax.random.PRNGKey(0)
    k1, k2, k3, k4 = jax.random.split(key, 4)

    # --- Small shapes consistent with Encoder(in_dim, hidden_dim) ------------
    batch, in_dim, hidden_dim = 8, 64, 32
    x = jax.random.normal(k1, (batch, in_dim), dtype=jnp.float32)
    w, b = _make_linear_params(k2, in_dim, hidden_dim)
    w_t = jnp.asarray(w.T)                        # (in_dim, hidden_dim)
    w_t_bf16 = w_t.astype(jnp.bfloat16)           # persistent pre-cast bf16 weight

    ref = jnp.maximum(x @ w.T + b, 0.0)

    # f32 path: exactness check.
    out_f32 = jax.block_until_ready(encoder_forward(x, w_t, b, compute_dtype=None))
    assert out_f32.shape == ref.shape
    assert jnp.allclose(out_f32, ref, atol=1e-5, rtol=1e-5), "f32 path mismatch"

    # Default bf16 path (f32 accumulation) -> looser tolerance.
    out_bf = jax.block_until_ready(encoder_forward(x, w_t_bf16, b))
    assert out_bf.dtype == x.dtype
    assert jnp.allclose(out_bf, ref, atol=3e-2, rtol=3e-2), "bf16 path mismatch"

    # --- Larger shapes: multi-M-tile, weight-stationary fused path -----------
    B2, K2, H2 = 1024, 1024, 256
    x2 = jax.random.normal(k3, (B2, K2), dtype=jnp.float32)
    w2, b2 = _make_linear_params(k4, K2, H2)
    w2_t = jnp.asarray(w2.T)
    ref2 = jnp.maximum(x2 @ w2.T + b2, 0.0)

    out2 = jax.block_until_ready(encoder_forward(x2, w2_t.astype(jnp.bfloat16), b2))
    assert jnp.allclose(out2, ref2, atol=5e-2, rtol=5e-2), "large bf16 mismatch"

    # --- Forced K-tiled fallback path (f32, tight check) ---------------------
    out3 = jax.block_until_ready(
        encoder_forward(x2, w2_t, b2, compute_dtype=None, k_tile=256))
    assert jnp.allclose(out3, ref2, atol=1e-3, rtol=1e-3), "K-tiled mismatch"

    print("KERNEL_OK")
</pallas_src>

<mosaic_0001>
module attributes {stable_mosaic.version = 11 : i64} {
  func.func @_encoder_kernel_fused(%arg0: i32, %arg1: i32, %arg2: memref<8x64xf32, #tpu.memory_space<vmem>>, %arg3: memref<64x128xf32, #tpu.memory_space<vmem>>, %arg4: memref<1x128xf32, #tpu.memory_space<vmem>>, %arg5: memref<8x128xf32, #tpu.memory_space<vmem>>) attributes {dimension_semantics = [#tpu.dimension_semantics<parallel>, #tpu.dimension_semantics<parallel>], iteration_bounds = array<i64: 1, 1>, scalar_prefetch = 0 : i64, scratch_operands = 0 : i64, tpu.core_type = #tpu.core_type<tc>, window_params = [{transform_indices = @transform_0, window_bounds = array<i64: 8, 64>}, {transform_indices = @transform_1, window_bounds = array<i64: 64, 128>}, {transform_indices = @transform_2, window_bounds = array<i64: 1, 128>}, {transform_indices = @transform_3, window_bounds = array<i64: 8, 128>}]} {
    %c0 = arith.constant 0 : index
    %c0_0 = arith.constant 0 : index
    %0 = vector.load %arg2[%c0, %c0_0] : memref<8x64xf32, #tpu.memory_space<vmem>>, vector<8x64xf32>
    %c0_1 = arith.constant 0 : index
    %c0_2 = arith.constant 0 : index
    %1 = vector.load %arg3[%c0_1, %c0_2] : memref<64x128xf32, #tpu.memory_space<vmem>>, vector<64x128xf32>
    %cst = arith.constant dense<0.000000e+00> : vector<8x128xf32>
    %2 = tpu.matmul %0, %1, %cst {dimension_numbers = #tpu.dot_dimension_numbers<[1], [0], [0], [1], [0, 0, 1, 1], [], []>} : vector<8x64xf32>, vector<64x128xf32>, vector<8x128xf32> -> vector<8x128xf32>
    %c0_3 = arith.constant 0 : index
    %c0_4 = arith.constant 0 : index
    %3 = vector.load %arg4[%c0_3, %c0_4] : memref<1x128xf32, #tpu.memory_space<vmem>>, vector<1x128xf32>
    %4 = vector.broadcast %3 : vector<1x128xf32> to vector<8x128xf32>
    %5 = arith.addf %2, %4 : vector<8x128xf32>
    %cst_5 = arith.constant 0.000000e+00 : f32
    %6 = vector.broadcast %cst_5 : f32 to vector<8x128xf32>
    %7 = arith.maximumf %5, %6 : vector<8x128xf32>
    %c0_6 = arith.constant 0 : index
    %c0_7 = arith.constant 0 : index
    %8 = vector.load %arg5[%c0_6, %c0_7] : memref<8x128xf32, #tpu.memory_space<vmem>>, vector<8x128xf32>
    tpu.vector_store %arg5[%c0_6, %c0_7], %7 {strides = array<i32>} : memref<8x128xf32, #tpu.memory_space<vmem>>, vector<8x128xf32>,
    return
  }
  func.func @transform_0(%arg0: i32, %arg1: i32) -> (i32, i32) {
    %c0_i32 = arith.constant 0 : i32
    %c0_i32_0 = arith.constant 0 : i32
    return %arg1, %c0_i32 : i32, i32
  }
  func.func @transform_1(%arg0: i32, %arg1: i32) -> (i32, i32) {
    %c0_i32 = arith.constant 0 : i32
    %c0_i32_0 = arith.constant 0 : i32
    return %c0_i32, %arg0 : i32, i32
  }
  func.func @transform_2(%arg0: i32, %arg1: i32) -> (i32, i32) {
    %c0_i32 = arith.constant 0 : i32
    %c0_i32_0 = arith.constant 0 : i32
    return %c0_i32, %arg0 : i32, i32
  }
  func.func @transform_3(%arg0: i32, %arg1: i32) -> (i32, i32) {
    %c0_i32 = arith.constant 0 : i32
    return %arg1, %arg0 : i32, i32
  }
}

</mosaic_0001>

<bundles_post_ra>
// kernel: tpu_custom_call.1
= control target key start
LH: loop header
LB: loop body
LE: loop exit
PB: predicated region body
PF: predicated region fallthrough
CT: control target
= control target key end

     0   :  { %s153_s0 = inlined_call_operand.vmem [shape: f32[8,64], index: 0, kind: input, shape index: {}]   ;;  %s154_s1 = inlined_call_operand.vmem [shape: f32[64,32], index: 1, kind: input, shape index: {}]   ;;  %s155_s2 = inlined_call_operand.vmem [shape: f32[1,32], index: 2, kind: input, shape index: {}]   ;;  %s156_s3 = inlined_call_operand.hbm [shape: f32[8,32], index: 3, kind: output, shape index: {}]  }
   0x1   :  { %v23_v0 = vld [vmem:[%s154_s1 + $0x38] sm:$0xff]  ;;  %v22_v1 = vld [vmem:[%s154_s1 + $0x30] sm:$0xff]  ;;  %v21_v2 = vld [vmem:[%s154_s1 + $0x28] sm:$0xff] }
   0x2   :  { %40 = vmatpush.msra.mxu0 %v23_v0 }
   0x4   :  { %41 = vmatpush.msra.mxu0 %v22_v1 }
   0x5   :  { %8 = vsyncpa [#allocation3], 0  ;;  %v20_v3 = vld [vmem:[%s154_s1 + $0x20] sm:$0xff]  ;;  %v19_v4 = vld [vmem:[%s154_s1 + $0x18] sm:$0xff]  ;;  %vm28_vm0 = vcmask 523264   ;;  %s99_s5 = smov [#allocation2]  }
   0x6   :  { %42 = vmatpush.msra.mxu0 %v21_v2  ;;  %v18_v5 = vld [vmem:[%s154_s1 + $0x10] sm:$0xff]  ;;  %v17_v6 = vld [vmem:[%s154_s1 + $0x8] sm:$0xff]  ;;  %v16_v7 = vld [vmem:[%s154_s1] sm:$0xff]  ;;  %s59_s6 = sshll.u32 %s99_s5, 4  ;;  %s61_s9 = sshll.u32 %s156_s3, 4  ;;  %s60_s6 = int_to_ptr.vmem [resolvable:$true] %s59_s6  ;;  %s62_s9 = int_to_ptr.hbm [resolvable:$true] %s61_s9 }
   0x7   :  { %v15_v8 = vld [vmem:[%s153_s0] sm:$0xff] }
   0x8   :  { %43 = vmatpush.msra.mxu0 %v20_v3  ;;  %v72_v9 = vld [vmem:[%s155_s2] ss:$0 sm:$0xff] }
   0xa   :  { %44 = vmatpush.msra.mxu0 %v19_v4 }
   0xc   :  { %45 = vmatpush.msra.mxu0 %v18_v5 }
   0xe   :  { %46 = vmatpush.msra.mxu0 %v17_v6 }
  0x10   :  { %47 = vmatpush.msra.mxu0 %v16_v7 }
  0x11   :  { %70 = vmatmul.msk.f32.vlgmr.msra.gmra.mxu0 %vm28_vm0, %v15_v8 }
  0x8e   :  { %v49_v10 = vpop.f32.mrf.mxu0 }
  0x8f   :  { %v50_v11 = vadd.f32 %v72_v9, %v49_v10 }
  0x91   :  { %v52_v12 = vmax.f32 %v50_v11, 0.0 }
  0x93   :  { %53 = vst [vmem:[#allocation2] sm:$0xff] %v52_v12 }
  0x94   :  { %64 = dma.vmem_to_hbm [thread:$0]  %s60_s6, 128, %s62_s9, [#allocation3]  }
  0x95   :  { %97 = dma.done.wait [#allocation3], 128  }
  0x96   :  { %98 = vsyncadd [#allocation3], 4294967168 }
  0x97   :  { %69 = vsyncpa [#allocation3], 1 }

</bundles_post_ra>
